<compile_context>
chip_gen: v7x
topology: tpu7x:2x2x1
jax: 0.10.0
libtpu: 0.0.40
codegen_flags: <defaults>
</compile_context>

<pallas_src>
import functools
import math

import jax
import jax.numpy as jnp
import numpy as np
from jax.experimental import pallas as pl
from jax.experimental.pallas import tpu as pltpu

_EPS = 1e-5
_INV_SQRT2 = 1.0 / math.sqrt(2.0)
_VMEM_LIMIT = 32 * 1024 * 1024  # safe on v5e/v6e (128 MiB) and v7x (64 MiB)


def _round_up(x, m):
    return (x + m - 1) // m * m


# --------------------------- pass 1: matmul + BN stats ---------------------------
def _matmul_stats_kernel(x_ref, w_ref, y_ref, sum_ref, sq_ref):
    @pl.when(pl.program_id(0) == 0)
    def _init():
        sum_ref[...] = jnp.zeros_like(sum_ref)
        sq_ref[...] = jnp.zeros_like(sq_ref)

    # packed complex conv: one MXU pass, contraction over 2*Cin (padded to 128)
    y = jnp.dot(x_ref[...], w_ref[...], preferred_element_type=jnp.float32)
    y_ref[...] = y
    # per-channel partial sums for exact whole-batch statistics
    sum_ref[...] += jnp.sum(y, axis=0, keepdims=True)
    sq_ref[...] += jnp.sum(y * y, axis=0, keepdims=True)


# --------------------------- pass 2: BN normalize + GELU -------------------------
def _bn_gelu_kernel(y_ref, sum_ref, sq_ref, gamma_ref, beta_ref, o_ref, *, inv_m):
    y = y_ref[...]
    mean = sum_ref[...] * inv_m                                   # (1, Cp)
    var = jnp.maximum(sq_ref[...] * inv_m - mean * mean, 0.0)     # biased var
    scale = jax.lax.rsqrt(var + _EPS) * gamma_ref[...]
    shift = beta_ref[...] - mean * scale
    z = y * scale + shift
    # exact (erf-based) GELU on real and imag parts (packed along lanes)
    o_ref[...] = 0.5 * z * (1.0 + jax.lax.erf(z * _INV_SQRT2))


# --------------------------------- wrapper ---------------------------------------
def conv_bn_activation(x_real, x_imag, params, *, tile_m=512):
    """x_real / x_imag: [N, Cin, H, W] float32. Returns complex64 [N, Cout, H, W]."""
    N, Cin, H, W = x_real.shape
    wr, wi, _br, _bi, gr, betar, gi, betai = params   # conv bias dropped: BN cancels it
    Cout = wr.shape[1]

    M = N * H * W
    K = 2 * Cin
    C2 = 2 * Cout
    Kp = _round_up(K, 128)          # lane-pad packed input channels
    Cp = _round_up(C2, 128)         # lane-pad packed output channels

    TM = _round_up(min(tile_m, _round_up(M, 8)), 8)
    Mp = _round_up(M, TM)
    num_tiles = Mp // TM

    # NCHW -> channels-last slab [M, Cin]
    def to_slab(v):
        return v.reshape(N, Cin, H * W).transpose(0, 2, 1).reshape(M, Cin)

    # packed, padded input [Mp, Kp] = [ xr | xi | 0 ]
    xp = jnp.concatenate([to_slab(x_real), to_slab(x_imag)], axis=1)
    xp = jnp.pad(xp, ((0, Mp - M), (0, Kp - K)))

    # packed, padded weight [Kp, Cp] = [[wr, wi], [-wi, wr]] zero-padded
    wp = jnp.concatenate(
        [jnp.concatenate([wr, wi], axis=1), jnp.concatenate([-wi, wr], axis=1)], axis=0)
    wp = jnp.pad(wp, ((0, Kp - K), (0, Cp - C2)))

    # packed BN affine params [1, Cp]
    gp = jnp.pad(jnp.concatenate([gr, gi], axis=1), ((0, 0), (0, Cp - C2)),
                 constant_values=1.0)
    bp = jnp.pad(jnp.concatenate([betar, betai], axis=1), ((0, 0), (0, Cp - C2)))

    row_spec_in = pl.BlockSpec((TM, Kp), lambda i: (i, 0))
    row_spec_out = pl.BlockSpec((TM, Cp), lambda i: (i, 0))
    const_spec = lambda shape: pl.BlockSpec(shape, lambda i: (0, 0))

    # ---- pass 1: y = xp @ wp per tile; accumulate per-channel sum / sumsq ----
    y, ysum, ysq = pl.pallas_call(
        _matmul_stats_kernel,
        grid=(num_tiles,),
        in_specs=[row_spec_in, const_spec((Kp, Cp))],
        out_specs=[row_spec_out, const_spec((1, Cp)), const_spec((1, Cp))],
        out_shape=[
            jax.ShapeDtypeStruct((Mp, Cp), jnp.float32),
            jax.ShapeDtypeStruct((1, Cp), jnp.float32),
            jax.ShapeDtypeStruct((1, Cp), jnp.float32),
        ],
        compiler_params=pltpu.CompilerParams(
            dimension_semantics=("arbitrary",),      # resident stat accumulators
            vmem_limit_bytes=_VMEM_LIMIT),
    )(xp, wp)

    # ---- pass 2: exact-batch-stat BN + erf-GELU, fully parallel per tile ----
    yout = pl.pallas_call(
        functools.partial(_bn_gelu_kernel, inv_m=1.0 / M),
        grid=(num_tiles,),
        in_specs=[row_spec_out, const_spec((1, Cp)), const_spec((1, Cp)),
                  const_spec((1, Cp)), const_spec((1, Cp))],
        out_specs=row_spec_out,
        out_shape=jax.ShapeDtypeStruct((Mp, Cp), jnp.float32),
        compiler_params=pltpu.CompilerParams(
            dimension_semantics=("parallel",),       # shard across TCs on v7x
            vmem_limit_bytes=_VMEM_LIMIT),
    )(y, ysum, ysq, gp, bp)

    # slice off padding, unpack real/imag, [M, Cout] -> NCHW
    yr = yout[:M, :Cout]
    yi = yout[:M, Cout:C2]

    def from_slab(v):
        return v.reshape(N, H * W, Cout).transpose(0, 2, 1).reshape(N, Cout, H, W)

    return jax.lax.complex(from_slab(yr), from_slab(yi))


# --------------------------------- reference -------------------------------------
def _reference(x_real, x_imag, params):
    """Pure-JAX reference with the PyTorch module's semantics (bias included)."""
    wr, wi, br, bi, gr, betar, gi, betai = params
    N, Cin, H, W = x_real.shape
    Cout = wr.shape[1]
    xr = x_real.reshape(N, Cin, -1).transpose(0, 2, 1).reshape(-1, Cin)
    xi = x_imag.reshape(N, Cin, -1).transpose(0, 2, 1).reshape(-1, Cin)
    yr = xr @ wr - xi @ wi + br
    yi = xr @ wi + xi @ wr + bi

    def bn(y, g, b):
        m = jnp.mean(y, axis=0, keepdims=True)
        v = jnp.mean((y - m) ** 2, axis=0, keepdims=True)
        return (y - m) / jnp.sqrt(v + _EPS) * g + b

    yr = bn(yr, gr, betar)
    yi = bn(yi, gi, betai)
    yr = jax.nn.gelu(yr, approximate=False)
    yi = jax.nn.gelu(yi, approximate=False)
    back = lambda v: v.reshape(N, H * W, Cout).transpose(0, 2, 1).reshape(N, Cout, H, W)
    return back(yr) + 1j * back(yi).astype(jnp.complex64)


def init_params(key, in_channels, out_channels):
    """Deterministic synthetic parameter init (shapes match the module's __init__)."""
    ks = jax.random.split(key, 4)
    bound = 1.0 / math.sqrt(in_channels)
    wr = jax.random.uniform(ks[0], (in_channels, out_channels), jnp.float32, -bound, bound)
    wi = jax.random.uniform(ks[1], (in_channels, out_channels), jnp.float32, -bound, bound)
    br = jax.random.uniform(ks[2], (1, out_channels), jnp.float32, -bound, bound)
    bi = jax.random.uniform(ks[3], (1, out_channels), jnp.float32, -bound, bound)
    gr = jnp.ones((1, out_channels), jnp.float32)
    betar = jnp.zeros((1, out_channels), jnp.float32)
    gi = jnp.ones((1, out_channels), jnp.float32)
    betai = jnp.zeros((1, out_channels), jnp.float32)
    return (wr, wi, br, bi, gr, betar, gi, betai)


if __name__ == "__main__":
    key = jax.random.PRNGKey(0)
    k_xr, k_xi, k_p = jax.random.split(key, 3)

    N, Cin, Cout, H, W = 2, 4, 8, 16, 16
    x_real = jax.random.normal(k_xr, (N, Cin, H, W), jnp.float32)
    x_imag = jax.random.normal(k_xi, (N, Cin, H, W), jnp.float32)
    params = init_params(k_p, Cin, Cout)

    ref = _reference(x_real, x_imag, params)

    # default tiling (single 512-row tile at this small M)
    out = jax.block_until_ready(conv_bn_activation(x_real, x_imag, params))
    np.testing.assert_allclose(np.asarray(out), np.asarray(ref), rtol=2e-5, atol=2e-5)

    # multi-tile path: exercises the cross-tile BN-statistics accumulation
    out_tiled = jax.block_until_ready(
        conv_bn_activation(x_real, x_imag, params, tile_m=128))
    np.testing.assert_allclose(np.asarray(out_tiled), np.asarray(ref), rtol=2e-5, atol=2e-5)

    assert out.shape == (N, Cout, H, W) and out.dtype == jnp.complex64
    print("KERNEL_OK")
</pallas_src>

<mosaic_0001>
module attributes {stable_mosaic.version = 11 : i64} {
  func.func @_matmul_stats_kernel(%arg0: i32, %arg1: memref<512x128xf32, #tpu.memory_space<vmem>>, %arg2: memref<128x128xf32, #tpu.memory_space<vmem>>, %arg3: memref<512x128xf32, #tpu.memory_space<vmem>>, %arg4: memref<1x128xf32, #tpu.memory_space<vmem>>, %arg5: memref<1x128xf32, #tpu.memory_space<vmem>>) attributes {dimension_semantics = [#tpu.dimension_semantics<arbitrary>], iteration_bounds = array<i64: 1>, scalar_prefetch = 0 : i64, scratch_operands = 0 : i64, tpu.core_type = #tpu.core_type<tc>, window_params = [{transform_indices = @transform_0, window_bounds = array<i64: 512, 128>}, {pipeline_mode = #tpu.pipeline_mode<synchronous>, transform_indices = @transform_1, window_bounds = array<i64: 128, 128>}, {transform_indices = @transform_2, window_bounds = array<i64: 512, 128>}, {pipeline_mode = #tpu.pipeline_mode<synchronous>, transform_indices = @transform_3, window_bounds = array<i64: 1, 128>}, {pipeline_mode = #tpu.pipeline_mode<synchronous>, transform_indices = @transform_4, window_bounds = array<i64: 1, 128>}]} {
    %c0_i32 = arith.constant 0 : i32
    %0 = arith.cmpi eq, %arg0, %c0_i32 : i32
    %1 = arith.extui %0 : i1 to i32
    %c0_i32_0 = arith.constant 0 : i32
    %2 = arith.cmpi ne, %1, %c0_i32_0 : i32
    scf.if %2 {
      %cst_16 = arith.constant 0.000000e+00 : f32
      %18 = vector.broadcast %cst_16 : f32 to vector<1x128xf32>
      %c0_17 = arith.constant 0 : index
      %c0_18 = arith.constant 0 : index
      %19 = vector.load %arg4[%c0_17, %c0_18] : memref<1x128xf32, #tpu.memory_space<vmem>>, vector<1x128xf32>
      tpu.vector_store %arg4[%c0_17, %c0_18], %18 {strides = array<i32>} : memref<1x128xf32, #tpu.memory_space<vmem>>, vector<1x128xf32>,
      %cst_19 = arith.constant 0.000000e+00 : f32
      %20 = vector.broadcast %cst_19 : f32 to vector<1x128xf32>
      %c0_20 = arith.constant 0 : index
      %c0_21 = arith.constant 0 : index
      %21 = vector.load %arg5[%c0_20, %c0_21] : memref<1x128xf32, #tpu.memory_space<vmem>>, vector<1x128xf32>
      tpu.vector_store %arg5[%c0_20, %c0_21], %20 {strides = array<i32>} : memref<1x128xf32, #tpu.memory_space<vmem>>, vector<1x128xf32>,
    } else {
    }
    %c0 = arith.constant 0 : index
    %c0_1 = arith.constant 0 : index
    %3 = vector.load %arg1[%c0, %c0_1] : memref<512x128xf32, #tpu.memory_space<vmem>>, vector<512x128xf32>
    %c0_2 = arith.constant 0 : index
    %c0_3 = arith.constant 0 : index
    %4 = vector.load %arg2[%c0_2, %c0_3] : memref<128x128xf32, #tpu.memory_space<vmem>>, vector<128x128xf32>
    %cst = arith.constant dense<0.000000e+00> : vector<512x128xf32>
    %5 = tpu.matmul %3, %4, %cst {dimension_numbers = #tpu.dot_dimension_numbers<[1], [0], [0], [1], [0, 0, 1, 1], [], []>} : vector<512x128xf32>, vector<128x128xf32>, vector<512x128xf32> -> vector<512x128xf32>
    %c0_4 = arith.constant 0 : index
    %c0_5 = arith.constant 0 : index
    %6 = vector.load %arg3[%c0_4, %c0_5] : memref<512x128xf32, #tpu.memory_space<vmem>>, vector<512x128xf32>
    tpu.vector_store %arg3[%c0_4, %c0_5], %5 {strides = array<i32>} : memref<512x128xf32, #tpu.memory_space<vmem>>, vector<512x128xf32>,
    %c0_6 = arith.constant 0 : index
    %c0_7 = arith.constant 0 : index
    %7 = vector.load %arg4[%c0_6, %c0_7] : memref<1x128xf32, #tpu.memory_space<vmem>>, vector<1x128xf32>
    %cst_8 = arith.constant dense<0.000000e+00> : vector<128xf32>
    %8 = vector.multi_reduction <add>, %5, %cst_8 [0] : vector<512x128xf32> to vector<128xf32>
    %9 = vector.shape_cast %8 : vector<128xf32> to vector<1x128xf32>
    %10 = arith.addf %7, %9 : vector<1x128xf32>
    %c0_9 = arith.constant 0 : index
    %c0_10 = arith.constant 0 : index
    %11 = vector.load %arg4[%c0_9, %c0_10] : memref<1x128xf32, #tpu.memory_space<vmem>>, vector<1x128xf32>
    tpu.vector_store %arg4[%c0_9, %c0_10], %10 {strides = array<i32>} : memref<1x128xf32, #tpu.memory_space<vmem>>, vector<1x128xf32>,
    %c0_11 = arith.constant 0 : index
    %c0_12 = arith.constant 0 : index
    %12 = vector.load %arg5[%c0_11, %c0_12] : memref<1x128xf32, #tpu.memory_space<vmem>>, vector<1x128xf32>
    %13 = arith.mulf %5, %5 : vector<512x128xf32>
    %cst_13 = arith.constant dense<0.000000e+00> : vector<128xf32>
    %14 = vector.multi_reduction <add>, %13, %cst_13 [0] : vector<512x128xf32> to vector<128xf32>
    %15 = vector.shape_cast %14 : vector<128xf32> to vector<1x128xf32>
    %16 = arith.addf %12, %15 : vector<1x128xf32>
    %c0_14 = arith.constant 0 : index
    %c0_15 = arith.constant 0 : index
    %17 = vector.load %arg5[%c0_14, %c0_15] : memref<1x128xf32, #tpu.memory_space<vmem>>, vector<1x128xf32>
    tpu.vector_store %arg5[%c0_14, %c0_15], %16 {strides = array<i32>} : memref<1x128xf32, #tpu.memory_space<vmem>>, vector<1x128xf32>,
    return
  }
  func.func @transform_0(%arg0: i32) -> (i32, i32) {
    %c0_i32 = arith.constant 0 : i32
    %c0_i32_0 = arith.constant 0 : i32
    return %arg0, %c0_i32 : i32, i32
  }
  func.func @transform_1(%arg0: i32) -> (i32, i32) {
    %c0_i32 = arith.constant 0 : i32
    %c0_i32_0 = arith.constant 0 : i32
    %c0_i32_1 = arith.constant 0 : i32
    return %c0_i32, %c0_i32_0 : i32, i32
  }
  func.func @transform_2(%arg0: i32) -> (i32, i32) {
    %c0_i32 = arith.constant 0 : i32
    %c0_i32_0 = arith.constant 0 : i32
    return %arg0, %c0_i32 : i32, i32
  }
  func.func @transform_3(%arg0: i32) -> (i32, i32) {
    %c0_i32 = arith.constant 0 : i32
    %c0_i32_0 = arith.constant 0 : i32
    %c0_i32_1 = arith.constant 0 : i32
    return %c0_i32, %c0_i32_0 : i32, i32
  }
  func.func @transform_4(%arg0: i32) -> (i32, i32) {
    %c0_i32 = arith.constant 0 : i32
    %c0_i32_0 = arith.constant 0 : i32
    %c0_i32_1 = arith.constant 0 : i32
    return %c0_i32, %c0_i32_0 : i32, i32
  }
}

</mosaic_0001>

<bundles_post_ra>
// kernel: tpu_custom_call.1
= control target key start
LH: loop header
LB: loop body
LE: loop exit
PB: predicated region body
PF: predicated region fallthrough
CT: control target
= control target key end

     0   :  { %10 = vsyncpa [#allocation3], 0  ;;  %s1516_s0 = inlined_call_operand.hbm [shape: f32[512,128], index: 0, kind: input, shape index: {}]   ;;  %s1517_s1 = inlined_call_operand.hbm [shape: f32[128,128], index: 1, kind: input, shape index: {}]   ;;  %s1518_s2 = inlined_call_operand.hbm [shape: f32[512,128], index: 2, kind: output, shape index: {0}]   ;;  %s1519_s3 = inlined_call_operand.hbm [shape: f32[1,128], index: 3, kind: output, shape index: {1}]   ;;  %s1520_s4 = inlined_call_operand.hbm [shape: f32[1,128], index: 4, kind: output, shape index: {2}]  }
   0x1   :  { %11 = vsyncpa [#allocation6], 0 }
   0x2   :  { %12 = vsyncpa [#allocation4], 0 }
   0x3   :  { %13 = vsyncpa [#allocation9], 0  ;;  %s1214_s15 = smov [#allocation2]   ;;  %s1096_s19 = scalar_lea.hbm %s1516_s0, 8192 }
   0x4   :  { %s19_s16 = sshll.u32 %s1214_s15, 4  ;;  %p1097_p0 = scmp.ne.s32.totalorder %s1516_s0, %s1096_s19  ;;  %s20_s16 = int_to_ptr.vmem [resolvable:$true] %s19_s16 }
   0x5   :  { %p1100_p1 = scmp.lt.u32.totalorder %s1096_s19, %s1516_s0 }
   0x7   :  { %p1102_p2 = pnand %p1100_p1, %p1097_p0 }
   0x9   :  { %1105 = shalt.err (!%p1102_p2)
}
   0xa   :  { %s1106_s24 = scalar_lea.vmem %s20_s16, 8192  ;;  %p1111_p4 = scmp.lt.s32.totalorder %s20_s16, %s20_s16 }
   0xb   :  { %p1107_p3 = scmp.ne.s32.totalorder %s20_s16, %s1106_s24  ;;  %p1112_p5 = scmp.lt.s32.totalorder %s1106_s24, %s1106_s24 }
   0xd   :  { %p1113_p6 = por %p1112_p5, %p1111_p4 }
   0xf   :  { %p1114_p7 = pnand %p1113_p6, %p1107_p3 }
  0x11   :  { %1117 = shalt.err (!%p1114_p7)
}
  0x12   :  { %s1215_s25 = smov 128   ;;  %s1216_s26 = smov 8  }
  0x13   :  { %25 = dma.hbm_to_vmem [thread:$0]  %s1516_s0, 8192, %s20_s16, [#allocation3], %s1215_s25, %s1215_s25, %s1216_s26  }
  0x14   :  { %s1217_s29 = smov [#allocation5]   ;;  %s1118_s7 = scalar_lea.hbm %s1517_s1, 2048 }
  0x15   :  { %s31_s30 = sshll.u32 %s1217_s29, 4  ;;  %p1119_p8 = scmp.ne.s32.totalorder %s1517_s1, %s1118_s7  ;;  %s32_s30 = int_to_ptr.vmem [resolvable:$true] %s31_s30 }
  0x16   :  { %p1122_p9 = scmp.lt.u32.totalorder %s1118_s7, %s1517_s1 }
  0x18   :  { %p1124_p10 = pnand %p1122_p9, %p1119_p8 }
  0x1a   :  { %1127 = shalt.err (!%p1124_p10)
}
  0x1b   :  { %s1128_s12 = scalar_lea.vmem %s32_s30, 2048  ;;  %p1133_p12 = scmp.lt.s32.totalorder %s32_s30, %s32_s30 }
  0x1c   :  { %p1129_p11 = scmp.ne.s32.totalorder %s32_s30, %s1128_s12  ;;  %p1134_p13 = scmp.lt.s32.totalorder %s1128_s12, %s1128_s12 }
  0x1e   :  { %p1135_p0 = por %p1134_p13, %p1133_p12 }
  0x20   :  { %p1136_p1 = pnand %p1135_p0, %p1129_p11 }
  0x22   :  { %1139 = shalt.err (!%p1136_p1)
}
  0x23   :  { %37 = dma.hbm_to_vmem [thread:$0]  %s1517_s1, 2048, %s32_s30, [#allocation6], %s1215_s25, %s1215_s25, %s1216_s26  }
  0x24   :  { %1206 = dma.done.wait [#allocation3], 8192  }
  0x25   :  { %1207 = vsyncadd [#allocation3], 4294959104 }
  0x26   :  { %1208 = dma.done.wait [#allocation6], 2048  }
  0x27   :  { %1209 = vsyncadd [#allocation6], 4294965248  ;;  %v114_v0 = vld [vmem:[#allocation5] sm:$0xff]  ;;  %v115_v1 = vld [vmem:[#allocation5 + $0x8] sm:$0xff]  ;;  %s1219_s1 = smov [#allocation7]  }
  0x28   :  { %v116_v2 = vld [vmem:[#allocation5 + $0x10] sm:$0xff]  ;;  %v1040_v3 = vpack.c.bf16 %v115_v1, %v114_v0  ;;  %v117_v4 = vld [vmem:[#allocation5 + $0x18] sm:$0xff]  ;;  %v118_v6 = vld [vmem:[#allocation5 + $0x20] sm:$0xff]  ;;  %s792_s14 = sshll.u32 %s1219_s1, 4  ;;  %s793_s14 = int_to_ptr.vmem [resolvable:$true] %s792_s14 }
  0x29   :  { %v1044_v5 = vpack.c.bf16 %v117_v4, %v116_v2  ;;  %v119_v7 = vld [vmem:[#allocation5 + $0x28] sm:$0xff]  ;;  %v50_v9 = vld [vmem:[#allocation2] sm:$0xff]  ;;  %v120_v10 = vld [vmem:[#allocation5 + $0x30] sm:$0xff]  ;;  %s1140_s15 = scalar_lea.vmem %s793_s14, 8192  ;;  %p1145_p3 = scmp.lt.s32.totalorder %s793_s14, %s793_s14 }
  0x2a   :  { %1041 = vmatprep.subr.bf16.mxu0 %v1040_v3  ;;  %1072 = vmatprep.subr.bf16.mxu1 %v1040_v3  ;;  %v1048_v8 = vpack.c.bf16 %v119_v7, %v118_v6  ;;  %v121_v11 = vld [vmem:[#allocation5 + $0x38] sm:$0xff]  ;;  %v122_v13 = vld [vmem:[#allocation5 + $0x40] sm:$0xff]  ;;  %v123_v14 = vld [vmem:[#allocation5 + $0x48] sm:$0xff]  ;;  %p1141_p2 = scmp.ne.s32.totalorder %s793_s14, %s1140_s15  ;;  %p1146_p4 = scmp.lt.s32.totalorder %s1140_s15, %s1140_s15 }
  0x2b   :  { %1043 = vmatpush3.bf16.msra.mxu0 %v1040_v3  ;;  %1080 = vmatpush3.bf16.msra.mxu1 %v1040_v3  ;;  %v1052_v12 = vpack.c.bf16 %v121_v11, %v120_v10  ;;  %v1056_v15 = vpack.c.bf16 %v123_v14, %v122_v13  ;;  %v124_v16 = vld [vmem:[#allocation5 + $0x50] sm:$0xff]  ;;  %v125_v17 = vld [vmem:[#allocation5 + $0x58] sm:$0xff]  ;;  %v82_v18 = vld [vmem:[#allocation2 + $0x100] sm:$0xff] }
  0x2c   :  { %1045 = vmatprep.subr.bf16.mxu0 %v1044_v5  ;;  %1073 = vmatprep.subr.bf16.mxu1 %v1044_v5  ;;  %v1060_v19 = vpack.c.bf16 %v125_v17, %v124_v16  ;;  %v126_v20 = vld [vmem:[#allocation5 + $0x60] sm:$0xff]  ;;  %v127_v21 = vld [vmem:[#allocation5 + $0x68] sm:$0xff]  ;;  %v128_v23 = vld [vmem:[#allocation5 + $0x70] sm:$0xff]  ;;  %p1147_p5 = por %p1146_p4, %p1145_p3 }
  0x2d   :  { %944 = vmatprep.mubr.f32.mxu0 %v50_v9  ;;  %992 = vmatprep.mubr.f32.mxu1 %v82_v18  ;;  %v1064_v22 = vpack.c.bf16 %v127_v21, %v126_v20  ;;  %v129_v24 = vld [vmem:[#allocation5 + $0x78] sm:$0xff]  ;;  %v51_v26 = vld [vmem:[#allocation2 + $0x8] sm:$0xff]  ;;  %v52_v28 = vld [vmem:[#allocation2 + $0x10] sm:$0xff] }
  0x2e   :  { %v1068_v25 = vpack.c.bf16 %v129_v24, %v128_v23  ;;  %v83_v27 = vld [vmem:[#allocation2 + $0x108] sm:$0xff]  ;;  %v84_v29 = vld [vmem:[#allocation2 + $0x110] sm:$0xff]  ;;  %v53_v30 = vld [vmem:[#allocation2 + $0x18] sm:$0xff]  ;;  %p1148_p6 = pnand %p1147_p5, %p1141_p2 }
  0x2f   :  { %1047 = vmatpush3.bf16.msra.mxu0 %v1044_v5  ;;  %1081 = vmatpush3.bf16.msra.mxu1 %v1044_v5  ;;  %v85_v31 = vld [vmem:[#allocation2 + $0x118] sm:$0xff]  ;;  %v54_v32 = vld [vmem:[#allocation2 + $0x20] sm:$0xff]  ;;  %v55_v34 = vld [vmem:[#allocation2 + $0x28] sm:$0xff] }
  0x30   :  { %1049 = vmatprep.subr.bf16.mxu0 %v1048_v8  ;;  %1074 = vmatprep.subr.bf16.mxu1 %v1048_v8  ;;  %v86_v33 = vld [vmem:[#allocation2 + $0x120] sm:$0xff]  ;;  %v87_v35 = vld [vmem:[#allocation2 + $0x128] sm:$0xff]  ;;  %v56_v36 = vld [vmem:[#allocation2 + $0x30] sm:$0xff] }
  0x31   :  { %v88_v37 = vld [vmem:[#allocation2 + $0x130] sm:$0xff]  ;;  %v57_v38 = vld [vmem:[#allocation2 + $0x38] sm:$0xff]  ;;  %v58_v40 = vld [vmem:[#allocation2 + $0x40] sm:$0xff] }
  0x32   :  { %v89_v39 = vld [vmem:[#allocation2 + $0x138] sm:$0xff]  ;;  %v90_v41 = vld [vmem:[#allocation2 + $0x140] sm:$0xff]  ;;  %v59_v42 = vld [vmem:[#allocation2 + $0x48] sm:$0xff] }
  0x33   :  { %1051 = vmatpush3.bf16.msra.mxu0 %v1048_v8  ;;  %1082 = vmatpush3.bf16.msra.mxu1 %v1048_v8  ;;  %v91_v43 = vld [vmem:[#allocation2 + $0x148] sm:$0xff]  ;;  %v60_v44 = vld [vmem:[#allocation2 + $0x50] sm:$0xff]  ;;  %v61_v46 = vld [vmem:[#allocation2 + $0x58] sm:$0xff] }
  0x34   :  { %1053 = vmatprep.subr.bf16.mxu0 %v1052_v12  ;;  %1075 = vmatprep.subr.bf16.mxu1 %v1052_v12  ;;  %v92_v45 = vld [vmem:[#allocation2 + $0x150] sm:$0xff]  ;;  %v93_v47 = vld [vmem:[#allocation2 + $0x158] sm:$0xff]  ;;  %v62_v48 = vld [vmem:[#allocation2 + $0x60] sm:$0xff] }
  0x35   :  { %v94_v49 = vld [vmem:[#allocation2 + $0x160] sm:$0xff]  ;;  %v63_v50 = vld [vmem:[#allocation2 + $0x68] sm:$0xff]  ;;  %v64_v52 = vld [vmem:[#allocation2 + $0x70] sm:$0xff] }
  0x36   :  { %v95_v51 = vld [vmem:[#allocation2 + $0x168] sm:$0xff]  ;;  %v96_v53 = vld [vmem:[#allocation2 + $0x170] sm:$0xff]  ;;  %v65_v54 = vld [vmem:[#allocation2 + $0x78] sm:$0xff] }
  0x37   :  { %1055 = vmatpush3.bf16.msra.mxu0 %v1052_v12  ;;  %1083 = vmatpush3.bf16.msra.mxu1 %v1052_v12  ;;  %v97_v55 = vld [vmem:[#allocation2 + $0x178] sm:$0xff]  ;;  %v66_v56 = vld [vmem:[#allocation2 + $0x80] sm:$0xff]  ;;  %v67_v58 = vld [vmem:[#allocation2 + $0x88] sm:$0xff] }
  0x38   :  { %1057 = vmatprep.subr.bf16.mxu0 %v1056_v15  ;;  %1076 = vmatprep.subr.bf16.mxu1 %v1056_v15  ;;  %v98_v57 = vld [vmem:[#allocation2 + $0x180] sm:$0xff]  ;;  %v99_v59 = vld [vmem:[#allocation2 + $0x188] sm:$0xff]  ;;  %v68_v60 = vld [vmem:[#allocation2 + $0x90] sm:$0xff] }
  0x39   :  { %v100_v61 = vld [vmem:[#allocation2 + $0x190] sm:$0xff]  ;;  %v69_v62 = vld [vmem:[#allocation2 + $0x98] sm:$0xff]  ;;  %v70_v0 = vld [vmem:[#allocation2 + $0xa0] sm:$0xff] }
  0x3a   :  { %v101_v63 = vld [vmem:[#allocation2 + $0x198] sm:$0xff]  ;;  %v102_v1 = vld [vmem:[#allocation2 + $0x1a0] sm:$0xff]  ;;  %v71_v2 = vld [vmem:[#allocation2 + $0xa8] sm:$0xff] }
  0x3b   :  { %1059 = vmatpush3.bf16.msra.mxu0 %v1056_v15  ;;  %1084 = vmatpush3.bf16.msra.mxu1 %v1056_v15  ;;  %v103_v3 = vld [vmem:[#allocation2 + $0x1a8] sm:$0xff]  ;;  %v72_v4 = vld [vmem:[#allocation2 + $0xb0] sm:$0xff]  ;;  %v73_v6 = vld [vmem:[#allocation2 + $0xb8] sm:$0xff] }
  0x3c   :  { %1061 = vmatprep.subr.bf16.mxu0 %v1060_v19  ;;  %1077 = vmatprep.subr.bf16.mxu1 %v1060_v19  ;;  %v104_v5 = vld [vmem:[#allocation2 + $0x1b0] sm:$0xff]  ;;  %v105_v7 = vld [vmem:[#allocation2 + $0x1b8] sm:$0xff]  ;;  %v74_v8 = vld [vmem:[#allocation2 + $0xc0] sm:$0xff] }
  0x3d   :  { %v106_v9 = vld [vmem:[#allocation2 + $0x1c0] sm:$0xff]  ;;  %v75_v10 = vld [vmem:[#allocation2 + $0xc8] sm:$0xff]  ;;  %v76_v12 = vld [vmem:[#allocation2 + $0xd0] sm:$0xff] }
  0x3e   :  { %v107_v11 = vld [vmem:[#allocation2 + $0x1c8] sm:$0xff]  ;;  %v108_v13 = vld [vmem:[#allocation2 + $0x1d0] sm:$0xff]  ;;  %v77_v14 = vld [vmem:[#allocation2 + $0xd8] sm:$0xff] }
  0x3f   :  { %1063 = vmatpush3.bf16.msra.mxu0 %v1060_v19  ;;  %1085 = vmatpush3.bf16.msra.mxu1 %v1060_v19  ;;  %v109_v15 = vld [vmem:[#allocation2 + $0x1d8] sm:$0xff]  ;;  %v78_v16 = vld [vmem:[#allocation2 + $0xe0] sm:$0xff]  ;;  %v79_v18 = vld [vmem:[#allocation2 + $0xe8] sm:$0xff] }
  0x40   :  { %1065 = vmatprep.subr.bf16.mxu0 %v1064_v22  ;;  %1078 = vmatprep.subr.bf16.mxu1 %v1064_v22  ;;  %v110_v17 = vld [vmem:[#allocation2 + $0x1e0] sm:$0xff]  ;;  %v111_v19 = vld [vmem:[#allocation2 + $0x1e8] sm:$0xff]  ;;  %v80_v20 = vld [vmem:[#allocation2 + $0xf0] sm:$0xff] }
  0x41   :  { %v112_v21 = vld [vmem:[#allocation2 + $0x1f0] sm:$0xff]  ;;  %v113_v23 = vld [vmem:[#allocation2 + $0x1f8] sm:$0xff] }
  0x43   :  { %1067 = vmatpush3.bf16.msra.mxu0 %v1064_v22  ;;  %1086 = vmatpush3.bf16.msra.mxu1 %v1064_v22  ;;  %v81_v22 = vld [vmem:[#allocation2 + $0xf8] sm:$0xff] }
  0x44   :  { %1069 = vmatprep.subr.bf16.mxu0 %v1068_v25  ;;  %1079 = vmatprep.subr.bf16.mxu1 %v1068_v25 }
  0x47   :  { %1071 = vmatpush3.bf16.msra.mxu0 %v1068_v25  ;;  %1087 = vmatpush3.bf16.msra.mxu1 %v1068_v25 }
  0x4a   :  { %945 = vmatmul.mubr.f32.vlgmr.msra.gmra.mrb[0].mxu0 %v51_v26  ;;  %993 = vmatmul.mubr.f32.vlgmr.msra.gmra.mrb[0].mxu1 %v83_v27 }
  0x4b   :  { %947 = vmatprep.mubr.f32.mxu0 %v52_v28  ;;  %995 = vmatprep.mubr.f32.mxu1 %v84_v29 }
  0x4e   :  { %948 = vmatmul.mubr.f32.gmra.mrb[2].mxu0 %v53_v30  ;;  %996 = vmatmul.mubr.f32.gmra.mrb[2].mxu1 %v85_v31 }
  0x4f   :  { %950 = vmatprep.mubr.f32.mxu0 %v54_v32  ;;  %998 = vmatprep.mubr.f32.mxu1 %v86_v33 }
  0x52   :  { %951 = vmatmul.mubr.f32.gmra.mrb[4].mxu0 %v55_v34  ;;  %999 = vmatmul.mubr.f32.gmra.mrb[4].mxu1 %v87_v35 }
  0x53   :  { %953 = vmatprep.mubr.f32.mxu0 %v56_v36  ;;  %1001 = vmatprep.mubr.f32.mxu1 %v88_v37 }
  0x56   :  { %954 = vmatmul.mubr.f32.gmra.mrb[6].mxu0 %v57_v38  ;;  %1002 = vmatmul.mubr.f32.gmra.mrb[6].mxu1 %v89_v39  ;;  %v1218_v38 = vmov 0.0  }
  0x57   :  { %956 = vmatprep.mubr.f32.mxu0 %v58_v40  ;;  %1004 = vmatprep.mubr.f32.mxu1 %v90_v41  ;;  %48 = vst [vmem:[#allocation8] sm:$0x1] %v1218_v38  ;;  %49 = vst [vmem:[#allocation10] sm:$0x1] %v1218_v38 }
  0x5a   :  { %957 = vmatmul.mubr.f32.gmra.mrb[8].mxu0 %v59_v42  ;;  %1005 = vmatmul.mubr.f32.gmra.mrb[8].mxu1 %v91_v43 }
  0x5b   :  { %959 = vmatprep.mubr.f32.mxu0 %v60_v44  ;;  %1007 = vmatprep.mubr.f32.mxu1 %v92_v45 }
  0x5e   :  { %960 = vmatmul.mubr.f32.gmra.mrb[10].mxu0 %v61_v46  ;;  %1008 = vmatmul.mubr.f32.gmra.mrb[10].mxu1 %v93_v47 }
  0x5f   :  { %962 = vmatprep.mubr.f32.mxu0 %v62_v48  ;;  %1010 = vmatprep.mubr.f32.mxu1 %v94_v49 }
  0x62   :  { %963 = vmatmul.mubr.f32.gmra.mrb[12].mxu0 %v63_v50  ;;  %1011 = vmatmul.mubr.f32.gmra.mrb[12].mxu1 %v95_v51 }
  0x63   :  { %965 = vmatprep.mubr.f32.mxu0 %v64_v52  ;;  %1013 = vmatprep.mubr.f32.mxu1 %v96_v53 }
  0x66   :  { %966 = vmatmul.mubr.f32.gmra.mrb[14].mxu0 %v65_v54  ;;  %1014 = vmatmul.mubr.f32.gmra.mrb[14].mxu1 %v97_v55 }
  0x67   :  { %968 = vmatprep.mubr.f32.mxu0 %v66_v56  ;;  %1016 = vmatprep.mubr.f32.mxu1 %v98_v57 }
  0x6a   :  { %969 = vmatmul.mubr.f32.gmra.mrb[16].mxu0 %v67_v58  ;;  %1017 = vmatmul.mubr.f32.gmra.mrb[16].mxu1 %v99_v59 }
  0x6b   :  { %971 = vmatprep.mubr.f32.mxu0 %v68_v60  ;;  %1019 = vmatprep.mubr.f32.mxu1 %v100_v61 }
  0x6e   :  { %972 = vmatmul.mubr.f32.gmra.mrb[18].mxu0 %v69_v62  ;;  %1020 = vmatmul.mubr.f32.gmra.mrb[18].mxu1 %v101_v63 }
  0x6f   :  { %974 = vmatprep.mubr.f32.mxu0 %v70_v0  ;;  %1022 = vmatprep.mubr.f32.mxu1 %v102_v1 }
  0x72   :  { %975 = vmatmul.mubr.f32.gmra.mrb[20].mxu0 %v71_v2  ;;  %1023 = vmatmul.mubr.f32.gmra.mrb[20].mxu1 %v103_v3 }
  0x73   :  { %977 = vmatprep.mubr.f32.mxu0 %v72_v4  ;;  %1025 = vmatprep.mubr.f32.mxu1 %v104_v5 }
  0x76   :  { %978 = vmatmul.mubr.f32.gmra.mrb[22].mxu0 %v73_v6  ;;  %1026 = vmatmul.mubr.f32.gmra.mrb[22].mxu1 %v105_v7 }
  0x77   :  { %980 = vmatprep.mubr.f32.mxu0 %v74_v8  ;;  %1028 = vmatprep.mubr.f32.mxu1 %v106_v9 }
  0x7a   :  { %981 = vmatmul.mubr.f32.gmra.mrb[24].mxu0 %v75_v10  ;;  %1029 = vmatmul.mubr.f32.gmra.mrb[24].mxu1 %v107_v11 }
  0x7b   :  { %983 = vmatprep.mubr.f32.mxu0 %v76_v12  ;;  %1031 = vmatprep.mubr.f32.mxu1 %v108_v13 }
  0x7e   :  { %984 = vmatmul.mubr.f32.gmra.mrb[26].mxu0 %v77_v14  ;;  %1032 = vmatmul.mubr.f32.gmra.mrb[26].mxu1 %v109_v15 }
  0x7f   :  { %986 = vmatprep.mubr.f32.mxu0 %v78_v16  ;;  %1034 = vmatprep.mubr.f32.mxu1 %v110_v17 }
  0x82   :  { %987 = vmatmul.mubr.f32.gmra.mrb[28].mxu0 %v79_v18  ;;  %1035 = vmatmul.mubr.f32.gmra.mrb[28].mxu1 %v111_v19 }
  0x83   :  { %989 = vmatprep.mubr.f32.mxu0 %v80_v20  ;;  %1037 = vmatprep.mubr.f32.mxu1 %v112_v21 }
  0x86   :  { %990 = vmatmul.mubr.f32.gmra.mrb[30].mxu0 %v81_v22  ;;  %1038 = vmatmul.mubr.f32.gmra.mrb[30].mxu1 %v113_v23 }
 0x11d   :  { %v946_v24 = vpop.f32.mrb[0].mxu0  ;;  %v1277_v25 = vpop.f32.mrb[0].mxu1 }
 0x11e   :  { %516 = vst [vmem:[#allocation7 + $0x8] sm:$0xff] %v946_v24  ;;  %v653_v26 = vmul.f32 %v946_v24, %v946_v24  ;;  %v196_v27 = vpop.f32.mrb[1].mxu0  ;;  %548 = vst [vmem:[#allocation7 + $0x108] sm:$0xff] %v1277_v25  ;;  %v1280_v28 = vpop.f32.mrb[1].mxu1 }
 0x11f   :  { %515 = vst [vmem:[#allocation7] sm:$0xff] %v196_v27  ;;  %v580_v29 = vadd.f32 %v946_v24, %v196_v27  ;;  %v652_v30 = vmul.f32 %v196_v27, %v196_v27  ;;  %547 = vst [vmem:[#allocation7 + $0x100] sm:$0xff] %v1280_v28 }
 0x121   :  { %v716_v31 = vadd.f32 %v653_v26, %v652_v30  ;;  %v949_v32 = vpop.f32.mrb[2].mxu0  ;;  %v1283_v33 = vpop.f32.mrb[2].mxu1 }
 0x122   :  { %518 = vst [vmem:[#allocation7 + $0x18] sm:$0xff] %v949_v32  ;;  %v206_v34 = vpop.f32.mrb[3].mxu0  ;;  %550 = vst [vmem:[#allocation7 + $0x118] sm:$0xff] %v1283_v33  ;;  %v1286_v35 = vpop.f32.mrb[3].mxu1  ;;  %v655_v39 = vmul.f32 %v949_v32, %v949_v32 }
 0x123   :  { %517 = vst [vmem:[#allocation7 + $0x10] sm:$0xff] %v206_v34  ;;  %v581_v36 = vadd.f32 %v580_v29, %v206_v34  ;;  %v654_v37 = vmul.f32 %v206_v34, %v206_v34  ;;  %549 = vst [vmem:[#allocation7 + $0x110] sm:$0xff] %v1286_v35 }
 0x125   :  { %v717_v40 = vadd.f32 %v716_v31, %v654_v37  ;;  %v952_v41 = vpop.f32.mrb[4].mxu0  ;;  %v582_v42 = vadd.f32 %v949_v32, %v581_v36  ;;  %v1289_v43 = vpop.f32.mrb[4].mxu1 }
 0x126   :  { %520 = vst [vmem:[#allocation7 + $0x28] sm:$0xff] %v952_v41  ;;  %v216_v44 = vpop.f32.mrb[5].mxu0  ;;  %552 = vst [vmem:[#allocation7 + $0x128] sm:$0xff] %v1289_v43  ;;  %v1292_v45 = vpop.f32.mrb[5].mxu1  ;;  %v657_v49 = vmul.f32 %v952_v41, %v952_v41 }
 0x127   :  { %519 = vst [vmem:[#allocation7 + $0x20] sm:$0xff] %v216_v44  ;;  %v583_v46 = vadd.f32 %v582_v42, %v216_v44  ;;  %v656_v47 = vmul.f32 %v216_v44, %v216_v44  ;;  %v718_v48 = vadd.f32 %v717_v40, %v655_v39  ;;  %551 = vst [vmem:[#allocation7 + $0x120] sm:$0xff] %v1292_v45 }
 0x129   :  { %v719_v50 = vadd.f32 %v718_v48, %v656_v47  ;;  %v955_v51 = vpop.f32.mrb[6].mxu0  ;;  %v584_v52 = vadd.f32 %v952_v41, %v583_v46  ;;  %v1295_v53 = vpop.f32.mrb[6].mxu1 }
 0x12a   :  { %522 = vst [vmem:[#allocation7 + $0x38] sm:$0xff] %v955_v51  ;;  %v226_v54 = vpop.f32.mrb[7].mxu0  ;;  %554 = vst [vmem:[#allocation7 + $0x138] sm:$0xff] %v1295_v53  ;;  %v1298_v55 = vpop.f32.mrb[7].mxu1  ;;  %v659_v59 = vmul.f32 %v955_v51, %v955_v51 }
 0x12b   :  { %521 = vst [vmem:[#allocation7 + $0x30] sm:$0xff] %v226_v54  ;;  %v585_v56 = vadd.f32 %v584_v52, %v226_v54  ;;  %v658_v57 = vmul.f32 %v226_v54, %v226_v54  ;;  %v720_v58 = vadd.f32 %v719_v50, %v657_v49  ;;  %553 = vst [vmem:[#allocation7 + $0x130] sm:$0xff] %v1298_v55 }
 0x12d   :  { %v721_v60 = vadd.f32 %v720_v58, %v658_v57  ;;  %v958_v61 = vpop.f32.mrb[8].mxu0  ;;  %v586_v62 = vadd.f32 %v955_v51, %v585_v56  ;;  %v1301_v63 = vpop.f32.mrb[8].mxu1 }
 0x12e   :  { %524 = vst [vmem:[#allocation7 + $0x48] sm:$0xff] %v958_v61  ;;  %v236_v0 = vpop.f32.mrb[9].mxu0  ;;  %556 = vst [vmem:[#allocation7 + $0x148] sm:$0xff] %v1301_v63  ;;  %v1304_v1 = vpop.f32.mrb[9].mxu1  ;;  %v661_v5 = vmul.f32 %v958_v61, %v958_v61 }
 0x12f   :  { %523 = vst [vmem:[#allocation7 + $0x40] sm:$0xff] %v236_v0  ;;  %v587_v2 = vadd.f32 %v586_v62, %v236_v0  ;;  %v660_v3 = vmul.f32 %v236_v0, %v236_v0  ;;  %v722_v4 = vadd.f32 %v721_v60, %v659_v59  ;;  %555 = vst [vmem:[#allocation7 + $0x140] sm:$0xff] %v1304_v1 }
 0x131   :  { %v723_v6 = vadd.f32 %v722_v4, %v660_v3  ;;  %v961_v7 = vpop.f32.mrb[10].mxu0  ;;  %v588_v8 = vadd.f32 %v958_v61, %v587_v2  ;;  %v1307_v9 = vpop.f32.mrb[10].mxu1 }
 0x132   :  { %526 = vst [vmem:[#allocation7 + $0x58] sm:$0xff] %v961_v7  ;;  %v246_v10 = vpop.f32.mrb[11].mxu0  ;;  %558 = vst [vmem:[#allocation7 + $0x158] sm:$0xff] %v1307_v9  ;;  %v1310_v11 = vpop.f32.mrb[11].mxu1  ;;  %v663_v15 = vmul.f32 %v961_v7, %v961_v7 }
 0x133   :  { %525 = vst [vmem:[#allocation7 + $0x50] sm:$0xff] %v246_v10  ;;  %v589_v12 = vadd.f32 %v588_v8, %v246_v10  ;;  %v662_v13 = vmul.f32 %v246_v10, %v246_v10  ;;  %v724_v14 = vadd.f32 %v723_v6, %v661_v5  ;;  %557 = vst [vmem:[#allocation7 + $0x150] sm:$0xff] %v1310_v11 }
 0x135   :  { %v725_v16 = vadd.f32 %v724_v14, %v662_v13  ;;  %v964_v17 = vpop.f32.mrb[12].mxu0  ;;  %v590_v18 = vadd.f32 %v961_v7, %v589_v12  ;;  %v1313_v19 = vpop.f32.mrb[12].mxu1 }
 0x136   :  { %528 = vst [vmem:[#allocation7 + $0x68] sm:$0xff] %v964_v17  ;;  %v256_v20 = vpop.f32.mrb[13].mxu0  ;;  %560 = vst [vmem:[#allocation7 + $0x168] sm:$0xff] %v1313_v19  ;;  %v1316_v21 = vpop.f32.mrb[13].mxu1  ;;  %v665_v26 = vmul.f32 %v964_v17, %v964_v17 }
 0x137   :  { %527 = vst [vmem:[#allocation7 + $0x60] sm:$0xff] %v256_v20  ;;  %v591_v22 = vadd.f32 %v590_v18, %v256_v20  ;;  %v664_v23 = vmul.f32 %v256_v20, %v256_v20  ;;  %v726_v24 = vadd.f32 %v725_v16, %v663_v15  ;;  %559 = vst [vmem:[#allocation7 + $0x160] sm:$0xff] %v1316_v21 }
 0x139   :  { %v727_v27 = vadd.f32 %v726_v24, %v664_v23  ;;  %v967_v29 = vpop.f32.mrb[14].mxu0  ;;  %v592_v30 = vadd.f32 %v964_v17, %v591_v22  ;;  %v1319_v31 = vpop.f32.mrb[14].mxu1 }
 0x13a   :  { %530 = vst [vmem:[#allocation7 + $0x78] sm:$0xff] %v967_v29  ;;  %v266_v32 = vpop.f32.mrb[15].mxu0  ;;  %562 = vst [vmem:[#allocation7 + $0x178] sm:$0xff] %v1319_v31  ;;  %v1322_v34 = vpop.f32.mrb[15].mxu1  ;;  %v667_v39 = vmul.f32 %v967_v29, %v967_v29 }
 0x13b   :  { %529 = vst [vmem:[#allocation7 + $0x70] sm:$0xff] %v266_v32  ;;  %v593_v36 = vadd.f32 %v592_v30, %v266_v32  ;;  %v666_v37 = vmul.f32 %v266_v32, %v266_v32  ;;  %v728_v38 = vadd.f32 %v727_v27, %v665_v26  ;;  %561 = vst [vmem:[#allocation7 + $0x170] sm:$0xff] %v1322_v34 }
 0x13d   :  { %v729_v40 = vadd.f32 %v728_v38, %v666_v37  ;;  %v970_v41 = vpop.f32.mrb[16].mxu0  ;;  %v594_v42 = vadd.f32 %v967_v29, %v593_v36  ;;  %v1325_v44 = vpop.f32.mrb[16].mxu1 }
 0x13e   :  { %532 = vst [vmem:[#allocation7 + $0x88] sm:$0xff] %v970_v41  ;;  %v276_v46 = vpop.f32.mrb[17].mxu0  ;;  %564 = vst [vmem:[#allocation7 + $0x188] sm:$0xff] %v1325_v44  ;;  %v1328_v47 = vpop.f32.mrb[17].mxu1  ;;  %v669_v51 = vmul.f32 %v970_v41, %v970_v41 }
 0x13f   :  { %531 = vst [vmem:[#allocation7 + $0x80] sm:$0xff] %v276_v46  ;;  %v595_v48 = vadd.f32 %v594_v42, %v276_v46  ;;  %v668_v49 = vmul.f32 %v276_v46, %v276_v46  ;;  %v730_v50 = vadd.f32 %v729_v40, %v667_v39  ;;  %563 = vst [vmem:[#allocation7 + $0x180] sm:$0xff] %v1328_v47 }
 0x141   :  { %v731_v52 = vadd.f32 %v730_v50, %v668_v49  ;;  %v973_v54 = vpop.f32.mrb[18].mxu0  ;;  %v596_v56 = vadd.f32 %v970_v41, %v595_v48  ;;  %v1331_v57 = vpop.f32.mrb[18].mxu1 }
 0x142   :  { %534 = vst [vmem:[#allocation7 + $0x98] sm:$0xff] %v973_v54  ;;  %v286_v58 = vpop.f32.mrb[19].mxu0  ;;  %566 = vst [vmem:[#allocation7 + $0x198] sm:$0xff] %v1331_v57  ;;  %v1334_v59 = vpop.f32.mrb[19].mxu1  ;;  %v671_v0 = vmul.f32 %v973_v54, %v973_v54 }
 0x143   :  { %533 = vst [vmem:[#allocation7 + $0x90] sm:$0xff] %v286_v58  ;;  %v597_v60 = vadd.f32 %v596_v56, %v286_v58  ;;  %v670_v61 = vmul.f32 %v286_v58, %v286_v58  ;;  %v732_v62 = vadd.f32 %v731_v52, %v669_v51  ;;  %565 = vst [vmem:[#allocation7 + $0x190] sm:$0xff] %v1334_v59 }
 0x145   :  { %v733_v2 = vadd.f32 %v732_v62, %v670_v61  ;;  %v976_v3 = vpop.f32.mrb[20].mxu0  ;;  %v598_v4 = vadd.f32 %v973_v54, %v597_v60  ;;  %v1337_v5 = vpop.f32.mrb[20].mxu1 }
 0x146   :  { %536 = vst [vmem:[#allocation7 + $0xa8] sm:$0xff] %v976_v3  ;;  %v296_v6 = vpop.f32.mrb[21].mxu0  ;;  %568 = vst [vmem:[#allocation7 + $0x1a8] sm:$0xff] %v1337_v5  ;;  %v1340_v7 = vpop.f32.mrb[21].mxu1  ;;  %v673_v13 = vmul.f32 %v976_v3, %v976_v3 }
 0x147   :  { %535 = vst [vmem:[#allocation7 + $0xa0] sm:$0xff] %v296_v6  ;;  %v599_v8 = vadd.f32 %v598_v4, %v296_v6  ;;  %v672_v10 = vmul.f32 %v296_v6, %v296_v6  ;;  %v734_v12 = vadd.f32 %v733_v2, %v671_v0  ;;  %567 = vst [vmem:[#allocation7 + $0x1a0] sm:$0xff] %v1340_v7 }
 0x149   :  { %v735_v14 = vadd.f32 %v734_v12, %v672_v10  ;;  %v979_v15 = vpop.f32.mrb[22].mxu0  ;;  %v600_v16 = vadd.f32 %v976_v3, %v599_v8  ;;  %v1343_v17 = vpop.f32.mrb[22].mxu1 }
 0x14a   :  { %538 = vst [vmem:[#allocation7 + $0xb8] sm:$0xff] %v979_v15  ;;  %v306_v18 = vpop.f32.mrb[23].mxu0  ;;  %570 = vst [vmem:[#allocation7 + $0x1b8] sm:$0xff] %v1343_v17  ;;  %v1346_v20 = vpop.f32.mrb[23].mxu1  ;;  %v675_v26 = vmul.f32 %v979_v15, %v979_v15 }
 0x14b   :  { %537 = vst [vmem:[#allocation7 + $0xb0] sm:$0xff] %v306_v18  ;;  %v601_v22 = vadd.f32 %v600_v16, %v306_v18  ;;  %v674_v23 = vmul.f32 %v306_v18, %v306_v18  ;;  %v736_v24 = vadd.f32 %v735_v14, %v673_v13  ;;  %569 = vst [vmem:[#allocation7 + $0x1b0] sm:$0xff] %v1346_v20 }
 0x14d   :  { %v737_v27 = vadd.f32 %v736_v24, %v674_v23  ;;  %v982_v29 = vpop.f32.mrb[24].mxu0  ;;  %v602_v30 = vadd.f32 %v979_v15, %v601_v22  ;;  %v1349_v32 = vpop.f32.mrb[24].mxu1 }
 0x14e   :  { %540 = vst [vmem:[#allocation7 + $0xc8] sm:$0xff] %v982_v29  ;;  %v316_v36 = vpop.f32.mrb[25].mxu0  ;;  %572 = vst [vmem:[#allocation7 + $0x1c8] sm:$0xff] %v1349_v32  ;;  %v1352_v37 = vpop.f32.mrb[25].mxu1  ;;  %v677_v41 = vmul.f32 %v982_v29, %v982_v29 }
 0x14f   :  { %539 = vst [vmem:[#allocation7 + $0xc0] sm:$0xff] %v316_v36  ;;  %v603_v38 = vadd.f32 %v602_v30, %v316_v36  ;;  %v676_v39 = vmul.f32 %v316_v36, %v316_v36  ;;  %v738_v40 = vadd.f32 %v737_v27, %v675_v26  ;;  %571 = vst [vmem:[#allocation7 + $0x1c0] sm:$0xff] %v1352_v37 }
 0x151   :  { %v739_v42 = vadd.f32 %v738_v40, %v676_v39  ;;  %v985_v46 = vpop.f32.mrb[26].mxu0  ;;  %v604_v48 = vadd.f32 %v982_v29, %v603_v38  ;;  %v1355_v49 = vpop.f32.mrb[26].mxu1 }
 0x152   :  { %542 = vst [vmem:[#allocation7 + $0xd8] sm:$0xff] %v985_v46  ;;  %v326_v50 = vpop.f32.mrb[27].mxu0  ;;  %574 = vst [vmem:[#allocation7 + $0x1d8] sm:$0xff] %v1355_v49  ;;  %v1358_v51 = vpop.f32.mrb[27].mxu1  ;;  %v679_v58 = vmul.f32 %v985_v46, %v985_v46 }
 0x153   :  { %541 = vst [vmem:[#allocation7 + $0xd0] sm:$0xff] %v326_v50  ;;  %v605_v52 = vadd.f32 %v604_v48, %v326_v50  ;;  %v678_v54 = vmul.f32 %v326_v50, %v326_v50  ;;  %v740_v56 = vadd.f32 %v739_v42, %v677_v41  ;;  %573 = vst [vmem:[#allocation7 + $0x1d0] sm:$0xff] %v1358_v51 }
 0x155   :  { %v741_v60 = vadd.f32 %v740_v56, %v678_v54  ;;  %v988_v61 = vpop.f32.mrb[28].mxu0  ;;  %v606_v62 = vadd.f32 %v985_v46, %v605_v52  ;;  %v1361_v0 = vpop.f32.mrb[28].mxu1 }
 0x156   :  { %544 = vst [vmem:[#allocation7 + $0xe8] sm:$0xff] %v988_v61  ;;  %v336_v2 = vpop.f32.mrb[29].mxu0  ;;  %576 = vst [vmem:[#allocation7 + $0x1e8] sm:$0xff] %v1361_v0  ;;  %v1364_v3 = vpop.f32.mrb[29].mxu1  ;;  %v681_v10 = vmul.f32 %v988_v61, %v988_v61 }
 0x157   :  { %543 = vst [vmem:[#allocation7 + $0xe0] sm:$0xff] %v336_v2  ;;  %v607_v4 = vadd.f32 %v606_v62, %v336_v2  ;;  %v680_v6 = vmul.f32 %v336_v2, %v336_v2  ;;  %v742_v8 = vadd.f32 %v741_v60, %v679_v58  ;;  %575 = vst [vmem:[#allocation7 + $0x1e0] sm:$0xff] %v1364_v3 }
 0x159   :  { %v743_v12 = vadd.f32 %v742_v8, %v680_v6  ;;  %v991_v13 = vpop.f32.mrb[30].mxu0  ;;  %v608_v14 = vadd.f32 %v988_v61, %v607_v4  ;;  %v1367_v15 = vpop.f32.mrb[30].mxu1 }
 0x15a   :  { %546 = vst [vmem:[#allocation7 + $0xf8] sm:$0xff] %v991_v13  ;;  %v346_v16 = vpop.f32.mrb[31].mxu0  ;;  %578 = vst [vmem:[#allocation7 + $0x1f8] sm:$0xff] %v1367_v15  ;;  %v1370_v18 = vpop.f32.mrb[31].mxu1 }
 0x15b   :  { %545 = vst [vmem:[#allocation7 + $0xf0] sm:$0xff] %v346_v16  ;;  %v609_v22 = vadd.f32 %v608_v14, %v346_v16  ;;  %v682_v23 = vmul.f32 %v346_v16, %v346_v16  ;;  %v744_v24 = vadd.f32 %v743_v12, %v681_v10  ;;  %577 = vst [vmem:[#allocation7 + $0x1f0] sm:$0xff] %v1370_v18 }
 0x15c   :  { %1151 = shalt.err (!%p1148_p6)
}
 0x15d   :  { %s1152_s18 = scalar_lea.hbm %s1518_s2, 8192 }
 0x15e   :  { %p1153_p7 = scmp.ne.s32.totalorder %s1518_s2, %s1152_s18  ;;  %p1156_p8 = scmp.lt.u32.totalorder %s1152_s18, %s1518_s2 }
 0x160   :  { %p1158_p9 = pnand %p1156_p8, %p1153_p7 }
 0x162   :  { %1161 = shalt.err (!%p1158_p9)
}
 0x163   :  { %798 = dma.vmem_to_hbm [thread:$0]  %s793_s14, 8192, %s1518_s2, [#allocation4], %s1215_s25, %s1215_s25, %s1216_s26   ;;  %v683_v26 = vmul.f32 %v991_v13, %v991_v13  ;;  %v610_v27 = vadd.f32 %v991_v13, %v609_v22  ;;  %v745_v29 = vadd.f32 %v744_v24, %v682_v23  ;;  %v684_v30 = vmul.f32 %v1280_v28, %v1280_v28 }
 0x164   :  { %v685_v39 = vmul.f32 %v1277_v25, %v1277_v25  ;;  %v686_v42 = vmul.f32 %v1286_v35, %v1286_v35  ;;  %v687_v50 = vmul.f32 %v1283_v33, %v1283_v33  ;;  %s1220_s2 = smov [#allocation8]   ;;  %s1221_s26 = smov [#allocation10]  }
 0x165   :  { %v746_v36 = vadd.f32 %v745_v29, %v683_v26  ;;  %v611_v38 = vadd.f32 %v610_v27, %v1280_v28  ;;  %v688_v28 = vmul.f32 %v1292_v45, %v1292_v45  ;;  %s805_s25 = sshll.u32 %s1220_s2, 4  ;;  %s815_s27 = sshll.u32 %s1221_s26, 4  ;;  %s806_s25 = int_to_ptr.vmem [resolvable:$true] %s805_s25  ;;  %s1484_s27 = int_to_ptr.vmem [resolvable:$true] %s815_s27 }
 0x166   :  { %s1162_s28 = scalar_lea.vmem %s806_s25, 16  ;;  %s1166_s29 = scalar_lea.vmem %s806_s25, 32 }
 0x167   :  { %v747_v40 = vadd.f32 %v746_v36, %v684_v30  ;;  %v612_v41 = vadd.f32 %v1277_v25, %v611_v38  ;;  %v689_v25 = vmul.f32 %v1289_v43, %v1289_v43  ;;  %p1163_p10 = scmp.ne.s32.totalorder %s806_s25, %s1162_s28  ;;  %p1167_p11 = scmp.lt.s32.totalorder %s806_s25, %s806_s25 }
 0x168   :  { %p1168_p12 = scmp.lt.s32.totalorder %s1166_s29, %s1162_s28 }
 0x169   :  { %v613_v46 = vadd.f32 %v612_v41, %v1286_v35  ;;  %v748_v48 = vadd.f32 %v747_v40, %v685_v39  ;;  %v690_v35 = vmul.f32 %v1298_v55, %v1298_v55 }
 0x16a   :  { %p1169_p13 = por %p1168_p12, %p1167_p11 }
 0x16b   :  { %v749_v52 = vadd.f32 %v748_v48, %v686_v42  ;;  %v614_v54 = vadd.f32 %v1283_v33, %v613_v46  ;;  %v691_v33 = vmul.f32 %v1295_v53, %v1295_v53 }
 0x16c   :  { %p1170_p0 = pnand %p1169_p13, %p1163_p10 }
 0x16d   :  { %v615_v56 = vadd.f32 %v614_v54, %v1292_v45  ;;  %v750_v58 = vadd.f32 %v749_v52, %v687_v50  ;;  %v692_v45 = vmul.f32 %v1304_v1, %v1304_v1 }
 0x16f   :  { %v751_v60 = vadd.f32 %v750_v58, %v688_v28  ;;  %v616_v61 = vadd.f32 %v1289_v43, %v615_v56  ;;  %v693_v43 = vmul.f32 %v1301_v63, %v1301_v63 }
 0x171   :  { %v617_v62 = vadd.f32 %v616_v61, %v1298_v55  ;;  %v752_v2 = vadd.f32 %v751_v60, %v689_v25  ;;  %v694_v55 = vmul.f32 %v1310_v11, %v1310_v11 }
 0x173   :  { %v753_v4 = vadd.f32 %v752_v2, %v690_v35  ;;  %v618_v6 = vadd.f32 %v1295_v53, %v617_v62  ;;  %v695_v53 = vmul.f32 %v1307_v9, %v1307_v9 }
 0x175   :  { %v619_v8 = vadd.f32 %v618_v6, %v1304_v1  ;;  %v754_v10 = vadd.f32 %v753_v4, %v691_v33  ;;  %v696_v1 = vmul.f32 %v1316_v21, %v1316_v21 }
 0x177   :  { %v755_v12 = vadd.f32 %v754_v10, %v692_v45  ;;  %v620_v13 = vadd.f32 %v1301_v63, %v619_v8  ;;  %v697_v63 = vmul.f32 %v1313_v19, %v1313_v19 }
 0x179   :  { %v621_v14 = vadd.f32 %v620_v13, %v1310_v11  ;;  %v756_v16 = vadd.f32 %v755_v12, %v693_v43  ;;  %v698_v11 = vmul.f32 %v1322_v34, %v1322_v34 }
 0x17b   :  { %v757_v22 = vadd.f32 %v756_v16, %v694_v55  ;;  %v622_v23 = vadd.f32 %v1307_v9, %v621_v14  ;;  %v699_v9 = vmul.f32 %v1319_v31, %v1319_v31 }
 0x17d   :  { %v623_v24 = vadd.f32 %v622_v23, %v1316_v21  ;;  %v758_v26 = vadd.f32 %v757_v22, %v695_v53  ;;  %v700_v21 = vmul.f32 %v1328_v47, %v1328_v47 }
 0x17f   :  { %v759_v27 = vadd.f32 %v758_v26, %v696_v1  ;;  %v624_v29 = vadd.f32 %v1313_v19, %v623_v24  ;;  %v701_v19 = vmul.f32 %v1325_v44, %v1325_v44 }
 0x181   :  { %v625_v30 = vadd.f32 %v624_v29, %v1322_v34  ;;  %v760_v36 = vadd.f32 %v759_v27, %v697_v63  ;;  %v702_v34 = vmul.f32 %v1334_v59, %v1334_v59 }
 0x183   :  { %v761_v38 = vadd.f32 %v760_v36, %v698_v11  ;;  %v626_v39 = vadd.f32 %v1319_v31, %v625_v30  ;;  %v703_v31 = vmul.f32 %v1331_v57, %v1331_v57  ;;  %v579_v36 = vld [vmem:[#allocation8] sm:$0x1] }
 0x185   :  { %v627_v40 = vadd.f32 %v626_v39, %v1328_v47  ;;  %v762_v41 = vadd.f32 %v761_v38, %v699_v9  ;;  %v704_v47 = vmul.f32 %v1340_v7, %v1340_v7  ;;  %v651_v38 = vld [vmem:[#allocation10] sm:$0x1] }
 0x187   :  { %v763_v42 = vadd.f32 %v762_v41, %v700_v21  ;;  %v628_v46 = vadd.f32 %v1325_v44, %v627_v40  ;;  %v705_v44 = vmul.f32 %v1337_v5, %v1337_v5 }
 0x189   :  { %v629_v48 = vadd.f32 %v628_v46, %v1334_v59  ;;  %v764_v50 = vadd.f32 %v763_v42, %v701_v19  ;;  %v706_v59 = vmul.f32 %v1346_v20, %v1346_v20 }
 0x18b   :  { %v765_v52 = vadd.f32 %v764_v50, %v702_v34  ;;  %v630_v54 = vadd.f32 %v1331_v57, %v629_v48  ;;  %v707_v57 = vmul.f32 %v1343_v17, %v1343_v17 }
 0x18d   :  { %v631_v28 = vadd.f32 %v630_v54, %v1340_v7  ;;  %v766_v56 = vadd.f32 %v765_v52, %v703_v31  ;;  %v708_v7 = vmul.f32 %v1352_v37, %v1352_v37 }
 0x18f   :  { %v767_v58 = vadd.f32 %v766_v56, %v704_v47  ;;  %v632_v25 = vadd.f32 %v1337_v5, %v631_v28  ;;  %v709_v5 = vmul.f32 %v1349_v32, %v1349_v32 }
 0x191   :  { %v633_v60 = vadd.f32 %v632_v25, %v1346_v20  ;;  %v768_v61 = vadd.f32 %v767_v58, %v705_v44  ;;  %v710_v20 = vmul.f32 %v1358_v51, %v1358_v51 }
 0x193   :  { %v769_v35 = vadd.f32 %v768_v61, %v706_v59  ;;  %v634_v62 = vadd.f32 %v1343_v17, %v633_v60  ;;  %v711_v17 = vmul.f32 %v1355_v49, %v1355_v49 }
 0x195   :  { %v635_v2 = vadd.f32 %v634_v62, %v1352_v37  ;;  %v770_v33 = vadd.f32 %v769_v35, %v707_v57  ;;  %v712_v37 = vmul.f32 %v1364_v3, %v1364_v3 }
 0x197   :  { %v771_v4 = vadd.f32 %v770_v33, %v708_v7  ;;  %v636_v6 = vadd.f32 %v1349_v32, %v635_v2  ;;  %v713_v32 = vmul.f32 %v1361_v0, %v1361_v0 }
 0x199   :  { %v637_v45 = vadd.f32 %v636_v6, %v1358_v51  ;;  %v772_v8 = vadd.f32 %v771_v4, %v709_v5  ;;  %v714_v51 = vmul.f32 %v1370_v18, %v1370_v18 }
 0x19b   :  { %v773_v10 = vadd.f32 %v772_v8, %v710_v20  ;;  %v638_v43 = vadd.f32 %v1355_v49, %v637_v45  ;;  %v715_v49 = vmul.f32 %v1367_v15, %v1367_v15 }
 0x19d   :  { %v639_v12 = vadd.f32 %v638_v43, %v1364_v3  ;;  %v774_v13 = vadd.f32 %v773_v10, %v711_v17 }
 0x19f   :  { %v775_v55 = vadd.f32 %v774_v13, %v712_v37  ;;  %v640_v14 = vadd.f32 %v1361_v0, %v639_v12 }
 0x1a1   :  { %v641_v16 = vadd.f32 %v640_v14, %v1370_v18  ;;  %v776_v53 = vadd.f32 %v775_v55, %v713_v32 }
 0x1a3   :  { %v642_v22 = vadd.f32 %v1367_v15, %v641_v16  ;;  %v777_v23 = vadd.f32 %v776_v53, %v714_v51 }
 0x1a5   :  { %v643_v3 = vrot.slane %v642_v22, 4  ;;  %v778_v1 = vadd.f32 %v777_v23, %v715_v49 }
 0x1a7   :  { %v644_v24 = vadd.f32 %v643_v3, %v642_v22  ;;  %v779_v26 = vrot.slane %v778_v1, 4 }
 0x1a9   :  { %v645_v63 = vrot.slane %v644_v24, 2  ;;  %v780_v27 = vadd.f32 %v779_v26, %v778_v1 }
 0x1ab   :  { %v646_v29 = vadd.f32 %v645_v63, %v644_v24  ;;  %v781_v0 = vrot.slane %v780_v27, 2 }
 0x1ad   :  { %v647_v11 = vrot.slane %v646_v29, 1  ;;  %v782_v30 = vadd.f32 %v781_v0, %v780_v27 }
 0x1af   :  { %v783_v18 = vrot.slane %v782_v30, 1  ;;  %v648_v9 = vadd.f32 %v647_v11, %v646_v29 }
 0x1b1   :  { %v649_v15 = vadd.f32 %v648_v9, %v579_v36  ;;  %v784_v39 = vadd.f32 %v783_v18, %v782_v30 }
 0x1b3   :  { %650 = vst [vmem:[#allocation8] sm:$0x1] %v649_v15  ;;  %v785_v21 = vadd.f32 %v784_v39, %v651_v38 }
 0x1b4   :  { %1173 = shalt.err (!%p1170_p0)
}
 0x1b5   :  { %s1174_s6 = scalar_lea.hbm %s1519_s3, 16 }
 0x1b6   :  { %p1175_p1 = scmp.ne.s32.totalorder %s1519_s3, %s1174_s6  ;;  %p1178_p2 = scmp.lt.u32.totalorder %s1174_s6, %s1519_s3 }
 0x1b8   :  { %p1180_p3 = pnand %p1178_p2, %p1175_p1 }
 0x1ba   :  { %1183 = shalt.err (!%p1180_p3)
}
 0x1bb   :  { %808 = dma.vmem_to_hbm [thread:$0]  %s806_s25, 16, %s1519_s3, [#allocation9]   ;;  %786 = vst [vmem:[#allocation10] sm:$0x1] %v785_v21 }
 0x1bc   :  { %s1184_s0 = scalar_lea.vmem %s1484_s27, 16  ;;  %s1188_s13 = scalar_lea.vmem %s1484_s27, 32 }
 0x1bd   :  { %p1185_p4 = scmp.ne.s32.totalorder %s1484_s27, %s1184_s0  ;;  %p1189_p5 = scmp.lt.s32.totalorder %s1484_s27, %s1484_s27 }
 0x1be   :  { %p1190_p6 = scmp.lt.s32.totalorder %s1188_s13, %s1184_s0 }
 0x1c0   :  { %p1191_p7 = por %p1190_p6, %p1189_p5 }
 0x1c2   :  { %p1192_p8 = pnand %p1191_p7, %p1185_p4 }
 0x1c4   :  { %1195 = shalt.err (!%p1192_p8)
}
 0x1c5   :  { %s1196_s15 = scalar_lea.hbm %s1520_s4, 16 }
 0x1c6   :  { %p1197_p9 = scmp.ne.s32.totalorder %s1520_s4, %s1196_s15  ;;  %p1200_p10 = scmp.lt.u32.totalorder %s1196_s15, %s1520_s4 }
 0x1c8   :  { %p1202_p11 = pnand %p1200_p10, %p1197_p9 }
 0x1ca   :  { %1205 = shalt.err (!%p1202_p11)
}
 0x1cb   :  { %818 = dma.vmem_to_hbm [thread:$0]  %s1484_s27, 16, %s1520_s4, [#allocation9]  }
 0x1cc   :  { %1210 = dma.done.wait [#allocation4], 8192  }
 0x1cd   :  { %1211 = vsyncadd [#allocation4], 4294959104 }
 0x1ce   :  { %1212 = dma.done.wait [#allocation9], 32  }
 0x1cf   :  { %1213 = vsyncadd [#allocation9], 4294967264 }
 0x1d0   :  { %828 = vsyncpa [#allocation3], 1 }
 0x1d1   :  { %829 = vsyncpa [#allocation6], 1 }
 0x1d2   :  { %830 = vsyncpa [#allocation4], 1 }
 0x1d3   :  { %831 = vsyncpa [#allocation9], 1 }

</bundles_post_ra>
